<compile_context>
chip_gen: v7x
topology: tpu7x:2x2x1
jax: 0.10.0
libtpu: 0.0.40
codegen_flags: <defaults>
</compile_context>

<pallas_src>
import functools

import jax
import jax.numpy as jnp
from jax.experimental import pallas as pl
from jax.experimental.pallas import tpu as pltpu


# --------------------------------- stage 1 ----------------------------------

def _stage1_weights_kernel(x2_ref, w_ref, v_ref, wout_ref, *, compute_dtype):
    """weights = softmax_over_batch( tanh(x2 @ W) @ v ), written as (B, Lk, 1)."""
    x2 = x2_ref[...]                                    # (B, Lk, D)
    B, Lk, D = x2.shape

    # One (B*Lk, D) @ (D, D) MXU matmul; bf16 operands, f32 accumulation.
    x2f = x2.reshape(B * Lk, D).astype(compute_dtype)
    W = w_ref[...].astype(compute_dtype)                # (D, D)
    t = jnp.tanh(jnp.dot(x2f, W, preferred_element_type=jnp.float32))  # (B*Lk, D) f32

    # Skinny MXU matvec instead of a VPU multiply + XLU lane reduce.
    v = v_ref[...]                                      # (D, 1) f32
    wlog = jnp.dot(t, v, preferred_element_type=jnp.float32)           # (B*Lk, 1)
    wlog = wlog.reshape(B, Lk, 1)                       # leading-dim split only

    # softmax over the BATCH axis (dim 0), exactly as the PyTorch module.
    wmax = jnp.max(wlog, axis=0, keepdims=True)
    we = jnp.exp(wlog - wmax)
    # Exact reciprocal here: only B*Lk elements and it feeds everything downstream.
    wout_ref[...] = (we / jnp.sum(we, axis=0, keepdims=True)).astype(wout_ref.dtype)


# --------------------------------- stage 2 ----------------------------------

def _lane_tile(w, reps: int):
    """out[..., j] = w[..., j % Lk] for j in [0, reps*Lk).

    Log-doubling concatenation along the lane axis: O(log reps) concat ops
    instead of the O(reps) operand list of jnp.concatenate([w]*reps).  Every
    piece is a whole number of copies of w, so any concatenation order keeps
    the j % Lk pattern.
    """
    if reps == 1:
        return w
    pieces = []
    chunk, r = w, reps
    while r:
        if r & 1:
            pieces.append(chunk)
        r >>= 1
        if r:
            chunk = jnp.concatenate([chunk, chunk], axis=-1)
    out = pieces[0]
    for p in pieces[1:]:
        out = jnp.concatenate([out, p], axis=-1)
    return out


def _stage2_attention_kernel(*refs, compute_dtype, apply_weights):
    """Per-batch-block attention: score -> softmax -> context.

    apply_weights=True (D % Lk == 0): the torch repeat/reshape weighting is
    applied algebraically (x scaled before the score matmul, ctx rescaled after
    the context matmul), so the weighted x2 is never materialized.
    """
    if apply_weights:
        x_ref, x2_ref, w_ref, out_ref = refs
    else:
        x_ref, x2_ref, out_ref = refs

    x = x_ref[...]                                      # (BB, Lq, D) f32
    x2 = x2_ref[...].astype(compute_dtype)              # (BB, Lk, D)
    Lk, D = x2.shape[1], x2.shape[2]

    if apply_weights:
        w_row = _lane_tile(w_ref[...], D // Lk)         # (BB, 1, D) f32
        xq = (x * w_row).astype(compute_dtype)
    else:
        xq = x.astype(compute_dtype)

    score = jnp.einsum('bqd,bkd->bqk', xq, x2,
                       preferred_element_type=jnp.float32)             # (BB, Lq, Lk)
    smax = jnp.max(score, axis=-1, keepdims=True)
    p = jnp.exp(score - smax)
    denom = jnp.sum(p, axis=-1, keepdims=True)                          # (BB, Lq, 1)
    ctx = jnp.einsum('bqk,bkd->bqd', p.astype(compute_dtype), x2,
                     preferred_element_type=jnp.float32)                # (BB, Lq, D)
    if apply_weights:
        ctx = ctx * w_row
    # Normalize the (Lq, D) context instead of the (Lq, Lk) attention matrix.
    if jnp.dtype(compute_dtype) == jnp.dtype(jnp.float32):
        ctx = ctx / denom                       # exact, for strict-parity f32 runs
    else:
        ctx = ctx * pl.reciprocal(denom, approx=True)
    out_ref[...] = ctx.astype(out_ref.dtype)


# --------------------------------- wrapper ----------------------------------

def _choose_batch_block(B, Lq, Lk, D, itemsize=4, target_bytes=2 << 20, min_steps=2):
    """Largest divisor of B whose per-step working set is ~target_bytes while
    keeping >= min_steps grid steps (so both v7x TensorCores stay busy)."""
    per_batch = (2 * Lq * D + Lk * D + Lk) * itemsize
    cap = max(1, target_bytes // max(per_batch, 1))
    if B >= min_steps:
        cap = min(cap, max(1, B // min_steps))
    cap = int(min(cap, B))
    bb = 1
    for d in range(1, cap + 1):
        if B % d == 0:
            bb = d
    return bb


def _vmem_limit_bytes(block_bytes):
    # Generous headroom over the actual blocks, explicit so the 16 MiB (v5e) /
    # 32 MiB default scoped limits never bind; capped at v7x's 64 MiB physical.
    return int(min(max(4 * int(block_bytes) + (4 << 20), 8 << 20), 64 << 20))


def aspect_attention_op2(x, x2, att_v, att_W, *, compute_dtype=jnp.bfloat16,
                         block_b=None):
    B, Lq, D = x.shape
    _, Lk, _ = x2.shape

    W = att_W.astype(jnp.float32)                       # (D, D) -- never replicated
    v_col = att_v.reshape(D, 1).astype(jnp.float32)     # (D, 1)

    # ---- Stage 1: batch-coupled softmax weights (only B*Lk floats to HBM) ----
    s1_bytes = 4 * (B * Lk * D + D * D + D + B * Lk)
    weights = pl.pallas_call(
        functools.partial(_stage1_weights_kernel, compute_dtype=compute_dtype),
        out_shape=jax.ShapeDtypeStruct((B, Lk, 1), jnp.float32),
        compiler_params=pltpu.CompilerParams(
            vmem_limit_bytes=_vmem_limit_bytes(s1_bytes)),
        cost_estimate=pl.CostEstimate(
            flops=2 * B * Lk * D * D + 2 * B * Lk * D + 4 * B * Lk,
            transcendentals=B * Lk * D + B * Lk,
            bytes_accessed=s1_bytes),
    )(x2, W, v_col)

    apply_in_kernel = (D % Lk == 0)
    if apply_in_kernel:
        x2_in = x2
        w_b1lk = weights.reshape(B, 1, Lk)              # tiny XLA reshape between calls
    else:
        # Rare path: torch's exact (i*D + j) % Lk mapping via plain XLA on the
        # tiny weights; x2 arrives pre-weighted, kernel skips the weighting.
        w_full = jnp.tile(weights.reshape(B, Lk), (1, D)).reshape(B, Lk, D)
        x2_in = (x2 * w_full).astype(x2.dtype)

    # ---- Stage 2: per-batch-block attention, pipelined over the batch -------
    bb = block_b if block_b is not None else _choose_batch_block(B, Lq, Lk, D)
    assert B % bb == 0, (B, bb)
    grid = (B // bb,)

    in_specs = [
        pl.BlockSpec((bb, Lq, D), lambda b: (b, 0, 0)),
        pl.BlockSpec((bb, Lk, D), lambda b: (b, 0, 0)),
    ]
    args = [x, x2_in]
    if apply_in_kernel:
        in_specs.append(pl.BlockSpec((bb, 1, Lk), lambda b: (b, 0, 0)))
        args.append(w_b1lk)

    s2_block_bytes = 4 * bb * (2 * Lq * D + Lk * D + Lk)
    ctx = pl.pallas_call(
        functools.partial(_stage2_attention_kernel,
                          compute_dtype=compute_dtype,
                          apply_weights=apply_in_kernel),
        out_shape=jax.ShapeDtypeStruct((B, Lq, D), x.dtype),
        grid_spec=pl.GridSpec(
            grid=grid,
            in_specs=in_specs,
            out_specs=pl.BlockSpec((bb, Lq, D), lambda b: (b, 0, 0)),
        ),
        compiler_params=pltpu.CompilerParams(
            dimension_semantics=("parallel",),
            vmem_limit_bytes=_vmem_limit_bytes(2 * s2_block_bytes)),
        cost_estimate=pl.CostEstimate(
            flops=4 * B * Lq * Lk * D + 4 * B * Lq * D + 3 * B * Lq * Lk,
            transcendentals=B * Lq * Lk,
            bytes_accessed=4 * B * (2 * Lq * D + Lk * D + Lk)),
    )(*args)
    return ctx


def reference(x, x2, att_v, att_W):
    """Pure-JAX transcription of the PyTorch forward (correctness oracle)."""
    B, Lk, D = x2.shape
    y = x2 @ att_W
    wlog = jnp.einsum('d,bkd->bk', att_v, jnp.tanh(y))
    weights = jax.nn.softmax(wlog, axis=0)
    w_full = jnp.tile(weights, (1, D)).reshape(B, Lk, D)   # == torch repeat(1, D).reshape
    out = x2 * w_full
    score = jnp.einsum('bqd,bkd->bqk', x, out)
    attn = jax.nn.softmax(score, axis=-1)
    return jnp.einsum('bqk,bkd->bqd', attn, out)


if __name__ == "__main__":
    init_stdev = 0.01
    key = jax.random.PRNGKey(0)
    kx, kx2, kv, kw = jax.random.split(key, 4)

    def make_inputs(B, Lq, Lk, D):
        x = jax.random.normal(kx, (B, Lq, D), dtype=jnp.float32)
        x2 = jax.random.normal(kx2, (B, Lk, D), dtype=jnp.float32)
        att_v = jax.random.normal(kv, (D,), dtype=jnp.float32) * init_stdev
        att_W = jax.random.normal(kw, (D, D), dtype=jnp.float32) * init_stdev
        return x, x2, att_v, att_W

    def check(B, Lq, Lk, D, compute_dtype, atol, rtol, tag):
        x, x2, att_v, att_W = make_inputs(B, Lq, Lk, D)
        ctx = aspect_attention_op2(x, x2, att_v, att_W, compute_dtype=compute_dtype)
        ctx = jax.block_until_ready(ctx)
        ref = reference(x, x2, att_v, att_W)
        assert ctx.shape == (B, Lq, D)
        out = ctx.astype(jnp.float32)
        err = float(jnp.max(jnp.abs(out - ref)))
        assert bool(jnp.allclose(out, ref, atol=atol, rtol=rtol)), \
            f"{tag}: max abs err = {err}"

    # main path (D % Lk == 0): bf16 MXU operands (default) and strict f32 parity
    check(2, 8, 8, 32, jnp.bfloat16, atol=3e-2, rtol=5e-2, tag="bf16 main")
    check(2, 8, 8, 32, jnp.float32, atol=1e-3, rtol=1e-2, tag="f32 main")
    # rare D % Lk != 0 path (exact torch repeat/reshape mapping, pre-weighted x2)
    check(2, 8, 5, 32, jnp.float32, atol=1e-3, rtol=1e-2, tag="f32 fallback")

    print("KERNEL_OK")
</pallas_src>

<mosaic_0001>
module attributes {stable_mosaic.version = 11 : i64} {
  func.func @_stage1_weights_kernel(%arg0: memref<2x8x32xf32, #tpu.memory_space<vmem>>, %arg1: memref<32x32xf32, #tpu.memory_space<vmem>>, %arg2: memref<32x1xf32, #tpu.memory_space<vmem>>, %arg3: memref<2x8x1xf32, #tpu.memory_space<vmem>>) attributes {dimension_semantics = [], scalar_prefetch = 0 : i64, scratch_operands = 0 : i64, tpu.core_type = #tpu.core_type<tc>} {
    %c0 = arith.constant 0 : index
    %c0_0 = arith.constant 0 : index
    %c0_1 = arith.constant 0 : index
    %0 = vector.load %arg0[%c0, %c0_0, %c0_1] : memref<2x8x32xf32, #tpu.memory_space<vmem>>, vector<2x8x32xf32>
    %1 = vector.shape_cast %0 : vector<2x8x32xf32> to vector<16x32xf32>
    %2 = arith.truncf %1 : vector<16x32xf32> to vector<16x32xbf16>
    %c0_2 = arith.constant 0 : index
    %c0_3 = arith.constant 0 : index
    %3 = vector.load %arg1[%c0_2, %c0_3] : memref<32x32xf32, #tpu.memory_space<vmem>>, vector<32x32xf32>
    %4 = arith.truncf %3 : vector<32x32xf32> to vector<32x32xbf16>
    %cst = arith.constant dense<0.000000e+00> : vector<16x32xf32>
    %5 = tpu.matmul %2, %4, %cst {dimension_numbers = #tpu.dot_dimension_numbers<[1], [0], [0], [1], [0, 0, 1, 1], [], []>} : vector<16x32xbf16>, vector<32x32xbf16>, vector<16x32xf32> -> vector<16x32xf32>
    %6 = math.tanh %5 : vector<16x32xf32>
    %c0_4 = arith.constant 0 : index
    %c0_5 = arith.constant 0 : index
    %7 = vector.load %arg2[%c0_4, %c0_5] : memref<32x1xf32, #tpu.memory_space<vmem>>, vector<32x1xf32>
    %cst_6 = arith.constant dense<0.000000e+00> : vector<16x1xf32>
    %8 = tpu.matmul %6, %7, %cst_6 {dimension_numbers = #tpu.dot_dimension_numbers<[1], [0], [0], [1], [0, 0, 1, 1], [], []>} : vector<16x32xf32>, vector<32x1xf32>, vector<16x1xf32> -> vector<16x1xf32>
    %9 = vector.shape_cast %8 : vector<16x1xf32> to vector<2x8x1xf32>
    %cst_7 = arith.constant dense<0xFF800000> : vector<8x1xf32>
    %10 = vector.multi_reduction <maximumf>, %9, %cst_7 [0] : vector<2x8x1xf32> to vector<8x1xf32>
    %11 = vector.shape_cast %10 : vector<8x1xf32> to vector<1x8x1xf32>
    %12 = vector.broadcast %11 : vector<1x8x1xf32> to vector<2x8x1xf32>
    %13 = arith.subf %9, %12 : vector<2x8x1xf32>
    %14 = math.exp %13 : vector<2x8x1xf32>
    %cst_8 = arith.constant dense<0.000000e+00> : vector<8x1xf32>
    %15 = vector.multi_reduction <add>, %14, %cst_8 [0] : vector<2x8x1xf32> to vector<8x1xf32>
    %16 = vector.shape_cast %15 : vector<8x1xf32> to vector<1x8x1xf32>
    %17 = vector.broadcast %16 : vector<1x8x1xf32> to vector<2x8x1xf32>
    %18 = arith.divf %14, %17 : vector<2x8x1xf32>
    %c0_9 = arith.constant 0 : index
    %c0_10 = arith.constant 0 : index
    %c0_11 = arith.constant 0 : index
    %19 = vector.load %arg3[%c0_9, %c0_10, %c0_11] : memref<2x8x1xf32, #tpu.memory_space<vmem>>, vector<2x8x1xf32>
    tpu.vector_store %arg3[%c0_9, %c0_10, %c0_11], %18 {strides = array<i32>} : memref<2x8x1xf32, #tpu.memory_space<vmem>>, vector<2x8x1xf32>,
    return
  }
}

</mosaic_0001>

<bundles_post_ra>
// kernel: tpu_custom_call.1
= control target key start
LH: loop header
LB: loop body
LE: loop exit
PB: predicated region body
PF: predicated region fallthrough
CT: control target
= control target key end

     0   :  { %8 = vsyncpa [#allocation3], 0  ;;  %s271_s12 = smov [#allocation2]   ;;  %s347_s0 = inlined_call_operand.hbm [shape: f32[2,8,32], index: 0, kind: input, shape index: {}]   ;;  %s348_s1 = inlined_call_operand.vmem [shape: f32[32,32], index: 1, kind: input, shape index: {}]   ;;  %s349_s2 = inlined_call_operand.vmem [shape: f32[32,1], index: 2, kind: input, shape index: {}]   ;;  %s350_s3 = inlined_call_operand.vmem [shape: f32[2,8,1], index: 3, kind: output, shape index: {}]  }
   0x1   :  { %s14_s13 = sshll.u32 %s271_s12, 4  ;;  %s247_s16 = scalar_lea.hbm %s347_s0, 256  ;;  %s15_s13 = int_to_ptr.vmem [resolvable:$true] %s14_s13 }
   0x2   :  { %p248_p0 = scmp.ne.s32.totalorder %s347_s0, %s247_s16  ;;  %p251_p1 = scmp.lt.u32.totalorder %s247_s16, %s347_s0 }
   0x4   :  { %p253_p2 = pnand %p251_p1, %p248_p0 }
   0x6   :  { %256 = shalt.err (!%p253_p2)
}
   0x7   :  { %s257_s21 = scalar_lea.vmem %s15_s13, 256  ;;  %p262_p4 = scmp.lt.s32.totalorder %s15_s13, %s15_s13 }
   0x8   :  { %p258_p3 = scmp.ne.s32.totalorder %s15_s13, %s257_s21  ;;  %p263_p5 = scmp.lt.s32.totalorder %s257_s21, %s257_s21 }
   0xa   :  { %p264_p6 = por %p263_p5, %p262_p4 }
   0xc   :  { %p265_p7 = pnand %p264_p6, %p258_p3 }
   0xe   :  { %268 = shalt.err (!%p265_p7)
}
   0xf   :  { %s272_s22 = smov 128   ;;  %s273_s23 = smov 8  }
  0x10   :  { %20 = dma.hbm_to_vmem [thread:$0]  %s347_s0, 256, %s15_s13, [#allocation3], %s272_s22, %s272_s22, %s273_s23  }
  0x11   :  { %269 = dma.done.wait [#allocation3], 256  }
  0x12   :  { %270 = vsyncadd [#allocation3], 4294967040  ;;  %v274_v0 = vmov 0.0   ;;  %vm275_vm0 = vmmov 0   ;;  %v32_v1 = vld [vmem:[%s348_s1] sm:$0xff]  ;;  %v33_v2 = vld [vmem:[%s348_s1 + $0x8] sm:$0xff] }
  0x13   :  { %205 = vmatprep.subr.bf16.mxu0 %v274_v0  ;;  %209 = vmatprep.mubr.msk.bf16.mxu0 %vm275_vm0, %v274_v0  ;;  %v34_v3 = vld [vmem:[%s348_s1 + $0x10] sm:$0xff]  ;;  %v36_v4 = vpack.c.bf16 %v33_v2, %v32_v1  ;;  %v35_v5 = vld [vmem:[%s348_s1 + $0x18] sm:$0xff]  ;;  %v29_v7 = vld [vmem:[#allocation2] sm:$0xff]  ;;  %vm38_vm1 = vcmask 261120   ;;  %vm170_vm2 = vcmask 7168  }
  0x14   :  { %v37_v6 = vpack.c.bf16 %v35_v5, %v34_v3  ;;  %v30_v8 = vld [vmem:[#allocation2 + $0x8] sm:$0xff]  ;;  %v85_v10 = vld [vmem:[%s349_s2] sm:$0xff]  ;;  %v87_v12 = vld [vmem:[%s349_s2 + $0x10] sm:$0xff] }
  0x15   :  { %206 = vmatpush3.bf16.msra.mxu0 %v36_v4  ;;  %v31_v9 = vpack.c.bf16 %v30_v8, %v29_v7  ;;  %v86_v11 = vld [vmem:[%s349_s2 + $0x8] sm:$0xff]  ;;  %v88_v14 = vld [vmem:[%s349_s2 + $0x18] sm:$0xff] }
  0x16   :  { %207 = vmatprep.subr.bf16.mxu0 %v274_v0  ;;  %v224_v13 = vpack.c.bf16 %v86_v11, %v85_v10  ;;  %v228_v15 = vpack.c.bf16 %v88_v14, %v87_v12 }
  0x18   :  { %225 = vmatprep.subr.bf16.mxu1 %v224_v13 }
  0x19   :  { %208 = vmatpush3.bf16.msra.mxu0 %v37_v6  ;;  %227 = vmatpush3.bf16.msra.mxu1 %v224_v13 }
  0x1a   :  { %229 = vmatprep.subr.bf16.mxu1 %v228_v15 }
  0x1c   :  { %210 = vmatmul.mubr.msk.bf16.vlgmr.msra.gmra.mrb[0].mxu0 %vm38_vm1, %v31_v9 }
  0x1d   :  { %231 = vmatpush3.bf16.msra.mxu1 %v228_v15 }
  0xef   :  { %v76_v16 = vpop.f32.mrb[0].mxu0 }
  0xf0   :  { %237 = vtanh.f32 %v76_v16  ;;  %v211_v17 = vpop.f32.mrb[1].mxu0 }
  0xf1   :  { %v79_v18 = vpop.f32.mrb[2].mxu0 }
  0xf2   :  { %239 = vtanh.f32 %v79_v18  ;;  %v212_v19 = vpop.f32.mrb[3].mxu0 }
  0xfa   :  { %v238_v20 = vpop.eup %237 }
  0xfb   :  { %221 = vmatprep.mubr.msk.f32.mxu1 %vm38_vm1, %v238_v20 }
  0xfc   :  { %v240_v21 = vpop.eup %239 }
  0xfd   :  { %222 = vmatmul.mubr.msk.f32.vlgmr.msra.gmra.mrb[0].mxu1 %vm38_vm1, %v240_v21 }
 0x1d0   :  { %v223_v22 = vpop.f32.mrb[0].mxu1 }
 0x1d1   :  { %v172_v23 = vsel %vm170_vm2, %v223_v22, -inf  ;;  %v161_v24 = vpop.f32.mrb[1].mxu1 }
 0x1d2   :  { %v171_v25 = vsel %vm170_vm2, %v161_v24, -inf }
 0x1d3   :  { %v173_v26 = vmax.f32 %v171_v25, %v172_v23 }
 0x1d5   :  { %v174_v27 = vsub.f32 %v161_v24, %v173_v26  ;;  %v175_v28 = vsub.f32 %v223_v22, %v173_v26 }
 0x1d7   :  { %v176_v29 = vmul.f32 1.442695, %v174_v27  ;;  %v178_v30 = vmul.f32 1.442695, %v175_v28 }
 0x1d9   :  { %241 = vpow2.f32 %v176_v29 }
 0x1da   :  { %243 = vpow2.f32 %v178_v30 }
 0x1e3   :  { %v242_v31 = vpop.eup %241 }
 0x1e4   :  { %v244_v32 = vpop.eup %243  ;;  %v180_v33 = vsel %vm170_vm2, %v242_v31, 0.0 }
 0x1e5   :  { %v181_v34 = vsel %vm170_vm2, %v244_v32, 0.0 }
 0x1e6   :  { %v182_v35 = vadd.f32 %v181_v34, %v180_v33 }
 0x1e8   :  { %245 = vrcp.f32 %v182_v35 }
 0x1f2   :  { %v246_v36 = vpop.eup %245 }
 0x1f3   :  { %v184_v37 = vmul.f32 %v246_v36, %v242_v31  ;;  %v185_v38 = vmul.f32 %v246_v36, %v244_v32 }
 0x1f5   :  { %186 = vst.msk [vmem:[%s350_s3] sm:$0xff] %vm170_vm2, %v184_v37  ;;  %187 = vst.msk [vmem:[%s350_s3 + $0x8] sm:$0xff] %vm170_vm2, %v185_v38 }
 0x1f6   :  { %192 = vsyncpa [#allocation3], 1 }

</bundles_post_ra>
